<compile_context>
chip_gen: v7x
topology: tpu7x:2x2x1
jax: 0.10.0
libtpu: 0.0.40
codegen_flags: <defaults>
</compile_context>

<pallas_src>
import jax
import jax.numpy as jnp
from jax.experimental import pallas as pl
from jax.experimental.pallas import tpu as pltpu

# Logical dims from the PyTorch module.
D_IN, D_H1, D_H2, D_OUT = 300, 150, 75, 4
# Lane-padded (multiple-of-128) hidden dims used inside the kernel.
P_H1, P_H2 = 256, 128


def _cdiv(a, b):
    return (a + b - 1) // b


def _round_up(n, m):
    return _cdiv(n, m) * m


def mlp_kernel(x_ref, w1_ref, b1_ref, w2_ref, b2_ref, w3_ref, b3_ref, o_ref):
    # x arrives in f32 (or bf16) and is cast to bf16 in-register for the MXU.
    x = x_ref[...].astype(jnp.bfloat16)

    h1 = jnp.dot(x, w1_ref[...], preferred_element_type=jnp.float32) + b1_ref[...]
    h1 = jnp.maximum(h1, 0.0).astype(jnp.bfloat16)

    h2 = jnp.dot(h1, w2_ref[...], preferred_element_type=jnp.float32) + b2_ref[...]
    h2 = jnp.maximum(h2, 0.0).astype(jnp.bfloat16)

    # Dropout(p=0.2) in eval mode == identity.
    # TODO(synk): training-mode dropout (random mask * 1/(1-p)) not implemented.

    # fc3: narrow-N matmul (tb,128)@(128,4) -> (tb,4) f32 logits stored directly.
    o_ref[...] = jnp.dot(h2, w3_ref[...], preferred_element_type=jnp.float32) + b3_ref[...]


def prepare_params(params):
    """Pad/cast nn.Linear params ONCE at init (hoisted out of the hot path).

    Weights are stored (in, out) so the kernel does x @ W + b. Hidden dims are
    zero-padded to lane multiples (zero columns -> zero activations -> zero
    contributions, so the math is unchanged); weights go to bf16, biases stay
    f32 (they add onto the f32 MXU accumulator). fc3's output dim stays 4 so
    the kernel emits narrow, lane-contiguous logits.
    """
    w1, b1, w2, b2, w3, b3 = params

    def pad(a, shape):
        return jnp.pad(a, [(0, s - d) for d, s in zip(a.shape, shape)])

    w1p = pad(w1, (D_IN, P_H1)).astype(jnp.bfloat16)
    w2p = pad(w2, (P_H1, P_H2)).astype(jnp.bfloat16)
    w3p = pad(w3, (P_H2, D_OUT)).astype(jnp.bfloat16)
    b1p = pad(b1, (1, P_H1)).astype(jnp.float32)
    b2p = pad(b2, (1, P_H2)).astype(jnp.float32)
    b3p = b3.astype(jnp.float32)                       # (1, 4), no pad needed
    return (w1p, b1p, w2p, b2p, w3p, b3p)


def net_forward(x, prepared_params, *, tb=1024):
    """x: (B, 300). prepared_params from prepare_params(). Returns (B, 4) f32."""
    B = x.shape[0]
    w1p, b1p, w2p, b2p, w3p, b3p = prepared_params

    # Mirror torch's x.to(float32); bf16 inputs are streamed as-is (kernel casts).
    if x.dtype != jnp.bfloat16 and x.dtype != jnp.float32:
        x = x.astype(jnp.float32)

    # Batch tiling: large tiles amortize the per-grid-step overhead; force >=2
    # grid steps for non-tiny batches so the "parallel" axis spans both v7x
    # TensorCores. tb is rounded to a sublane multiple, so batch-pad waste is
    # bounded by 8 rows per tile (instead of up to a whole tile).
    n_tiles = max(1, _cdiv(B, tb))
    if B >= 16:
        n_tiles = max(n_tiles, 2)
    tb = _round_up(_cdiv(B, n_tiles), 8)
    B_pad = n_tiles * tb
    if B_pad != B:
        x = jnp.pad(x, ((0, B_pad - B), (0, 0)))

    const = lambda shape: pl.BlockSpec(shape, lambda i: (0, 0))  # VMEM-resident params

    flops = 2 * B_pad * (D_IN * P_H1 + P_H1 * P_H2 + P_H2 * D_OUT)
    bytes_accessed = (
        B_pad * D_IN * x.dtype.itemsize                     # x streamed once (no wrapper pass)
        + (D_IN * P_H1 + P_H1 * P_H2 + P_H2 * D_OUT) * 2    # bf16 weights
        + (P_H1 + P_H2 + D_OUT) * 4                         # f32 biases
        + B_pad * D_OUT * 4                                 # narrow f32 logits
    )

    out = pl.pallas_call(
        mlp_kernel,
        out_shape=jax.ShapeDtypeStruct((B_pad, D_OUT), jnp.float32),
        grid=(n_tiles,),
        in_specs=[
            pl.BlockSpec((tb, D_IN), lambda i: (i, 0)),     # x streamed per batch tile
            const(w1p.shape), const(b1p.shape),
            const(w2p.shape), const(b2p.shape),
            const(w3p.shape), const(b3p.shape),
        ],
        out_specs=pl.BlockSpec((tb, D_OUT), lambda i: (i, 0)),
        compiler_params=pltpu.CompilerParams(
            dimension_semantics=("parallel",),              # v7x: split batch over 2 TCs
            vmem_limit_bytes=32 * 1024 * 1024),
        cost_estimate=pl.CostEstimate(
            flops=int(flops), transcendentals=0, bytes_accessed=int(bytes_accessed)),
    )(x, w1p, b1p, w2p, b2p, w3p, b3p)

    return out if B_pad == B else out[:B]


def init_params(key):
    """Deterministic synthetic parameters matching nn.Linear shapes.

    PyTorch stores Linear weight as (out_features, in_features); we keep the
    transposed (in, out) layout so the kernel does x @ W + b directly.
    """
    k1, k2, k3, k4, k5, k6 = jax.random.split(key, 6)

    def linear(kw, kb, fan_in, fan_out):
        bound = 1.0 / jnp.sqrt(fan_in)
        w = jax.random.uniform(kw, (fan_in, fan_out), jnp.float32, -bound, bound)
        b = jax.random.uniform(kb, (1, fan_out), jnp.float32, -bound, bound)
        return w, b

    w1, b1 = linear(k1, k2, D_IN, D_H1)
    w2, b2 = linear(k3, k4, D_H1, D_H2)
    w3, b3 = linear(k5, k6, D_H2, D_OUT)
    return (w1, b1, w2, b2, w3, b3)


if __name__ == "__main__":
    key = jax.random.PRNGKey(0)
    kx, kp = jax.random.split(key)

    B = 8
    x = jax.random.normal(kx, (B, D_IN), dtype=jnp.float32)
    params = init_params(kp)
    prepared = prepare_params(params)       # once at init, hoisted out of forward

    out = net_forward(x, prepared)
    out = jax.block_until_ready(out)
    assert out.shape == (B, D_OUT)

    # Reference in plain JAX, mimicking the kernel's bf16 inputs / f32 accumulation
    # (bf16 is an intentional inference precision choice; tolerance ~1e-2).
    w1, b1, w2, b2, w3, b3 = params
    xb = x.astype(jnp.bfloat16)
    h1 = jnp.maximum(jnp.dot(xb, w1.astype(jnp.bfloat16),
                             preferred_element_type=jnp.float32) + b1, 0.0).astype(jnp.bfloat16)
    h2 = jnp.maximum(jnp.dot(h1, w2.astype(jnp.bfloat16),
                             preferred_element_type=jnp.float32) + b2, 0.0).astype(jnp.bfloat16)
    ref = jnp.dot(h2, w3.astype(jnp.bfloat16),
                  preferred_element_type=jnp.float32) + b3

    assert jnp.allclose(out, ref, atol=1e-2, rtol=1e-2), float(jnp.max(jnp.abs(out - ref)))

    print("KERNEL_OK")
</pallas_src>

<mosaic_0001>
module attributes {stable_mosaic.version = 11 : i64} {
  func.func @mlp_kernel(%arg0: i32, %arg1: memref<8x300xf32, #tpu.memory_space<vmem>>, %arg2: memref<300x256xbf16, #tpu.memory_space<vmem>>, %arg3: memref<1x256xf32, #tpu.memory_space<vmem>>, %arg4: memref<256x128xbf16, #tpu.memory_space<vmem>>, %arg5: memref<1x128xf32, #tpu.memory_space<vmem>>, %arg6: memref<128x4xbf16, #tpu.memory_space<vmem>>, %arg7: memref<1x4xf32, #tpu.memory_space<vmem>>, %arg8: memref<8x4xf32, #tpu.memory_space<vmem>>) attributes {dimension_semantics = [#tpu.dimension_semantics<parallel>], iteration_bounds = array<i64: 1>, scalar_prefetch = 0 : i64, scratch_operands = 0 : i64, tpu.core_type = #tpu.core_type<tc>, window_params = [{transform_indices = @transform_0, window_bounds = array<i64: 8, 300>}, {pipeline_mode = #tpu.pipeline_mode<synchronous>, transform_indices = @transform_1, window_bounds = array<i64: 300, 256>}, {pipeline_mode = #tpu.pipeline_mode<synchronous>, transform_indices = @transform_2, window_bounds = array<i64: 1, 256>}, {pipeline_mode = #tpu.pipeline_mode<synchronous>, transform_indices = @transform_3, window_bounds = array<i64: 256, 128>}, {pipeline_mode = #tpu.pipeline_mode<synchronous>, transform_indices = @transform_4, window_bounds = array<i64: 1, 128>}, {pipeline_mode = #tpu.pipeline_mode<synchronous>, transform_indices = @transform_5, window_bounds = array<i64: 128, 4>}, {pipeline_mode = #tpu.pipeline_mode<synchronous>, transform_indices = @transform_6, window_bounds = array<i64: 1, 4>}, {transform_indices = @transform_7, window_bounds = array<i64: 8, 4>}]} {
    %c0 = arith.constant 0 : index
    %c0_0 = arith.constant 0 : index
    %0 = vector.load %arg1[%c0, %c0_0] : memref<8x300xf32, #tpu.memory_space<vmem>>, vector<8x300xf32>
    %1 = arith.truncf %0 : vector<8x300xf32> to vector<8x300xbf16>
    %c0_1 = arith.constant 0 : index
    %c0_2 = arith.constant 0 : index
    %2 = vector.load %arg2[%c0_1, %c0_2] : memref<300x256xbf16, #tpu.memory_space<vmem>>, vector<300x256xbf16>
    %cst = arith.constant dense<0.000000e+00> : vector<8x256xf32>
    %3 = tpu.matmul %1, %2, %cst {dimension_numbers = #tpu.dot_dimension_numbers<[1], [0], [0], [1], [0, 0, 1, 1], [], []>} : vector<8x300xbf16>, vector<300x256xbf16>, vector<8x256xf32> -> vector<8x256xf32>
    %c0_3 = arith.constant 0 : index
    %c0_4 = arith.constant 0 : index
    %4 = vector.load %arg3[%c0_3, %c0_4] : memref<1x256xf32, #tpu.memory_space<vmem>>, vector<1x256xf32>
    %5 = vector.broadcast %4 : vector<1x256xf32> to vector<8x256xf32>
    %6 = arith.addf %3, %5 : vector<8x256xf32>
    %cst_5 = arith.constant 0.000000e+00 : f32
    %7 = vector.broadcast %cst_5 : f32 to vector<8x256xf32>
    %8 = arith.maximumf %6, %7 : vector<8x256xf32>
    %9 = arith.truncf %8 : vector<8x256xf32> to vector<8x256xbf16>
    %c0_6 = arith.constant 0 : index
    %c0_7 = arith.constant 0 : index
    %10 = vector.load %arg4[%c0_6, %c0_7] : memref<256x128xbf16, #tpu.memory_space<vmem>>, vector<256x128xbf16>
    %cst_8 = arith.constant dense<0.000000e+00> : vector<8x128xf32>
    %11 = tpu.matmul %9, %10, %cst_8 {dimension_numbers = #tpu.dot_dimension_numbers<[1], [0], [0], [1], [0, 0, 1, 1], [], []>} : vector<8x256xbf16>, vector<256x128xbf16>, vector<8x128xf32> -> vector<8x128xf32>
    %c0_9 = arith.constant 0 : index
    %c0_10 = arith.constant 0 : index
    %12 = vector.load %arg5[%c0_9, %c0_10] : memref<1x128xf32, #tpu.memory_space<vmem>>, vector<1x128xf32>
    %13 = vector.broadcast %12 : vector<1x128xf32> to vector<8x128xf32>
    %14 = arith.addf %11, %13 : vector<8x128xf32>
    %cst_11 = arith.constant 0.000000e+00 : f32
    %15 = vector.broadcast %cst_11 : f32 to vector<8x128xf32>
    %16 = arith.maximumf %14, %15 : vector<8x128xf32>
    %17 = arith.truncf %16 : vector<8x128xf32> to vector<8x128xbf16>
    %c0_12 = arith.constant 0 : index
    %c0_13 = arith.constant 0 : index
    %18 = vector.load %arg6[%c0_12, %c0_13] : memref<128x4xbf16, #tpu.memory_space<vmem>>, vector<128x4xbf16>
    %cst_14 = arith.constant dense<0.000000e+00> : vector<8x4xf32>
    %19 = tpu.matmul %17, %18, %cst_14 {dimension_numbers = #tpu.dot_dimension_numbers<[1], [0], [0], [1], [0, 0, 1, 1], [], []>} : vector<8x128xbf16>, vector<128x4xbf16>, vector<8x4xf32> -> vector<8x4xf32>
    %c0_15 = arith.constant 0 : index
    %c0_16 = arith.constant 0 : index
    %20 = vector.load %arg7[%c0_15, %c0_16] : memref<1x4xf32, #tpu.memory_space<vmem>>, vector<1x4xf32>
    %21 = vector.broadcast %20 : vector<1x4xf32> to vector<8x4xf32>
    %22 = arith.addf %19, %21 : vector<8x4xf32>
    %c0_17 = arith.constant 0 : index
    %c0_18 = arith.constant 0 : index
    %23 = vector.load %arg8[%c0_17, %c0_18] : memref<8x4xf32, #tpu.memory_space<vmem>>, vector<8x4xf32>
    tpu.vector_store %arg8[%c0_17, %c0_18], %22 {strides = array<i32>} : memref<8x4xf32, #tpu.memory_space<vmem>>, vector<8x4xf32>,
    return
  }
  func.func @transform_0(%arg0: i32) -> (i32, i32) {
    %c0_i32 = arith.constant 0 : i32
    %c0_i32_0 = arith.constant 0 : i32
    return %arg0, %c0_i32 : i32, i32
  }
  func.func @transform_1(%arg0: i32) -> (i32, i32) {
    %c0_i32 = arith.constant 0 : i32
    %c0_i32_0 = arith.constant 0 : i32
    %c0_i32_1 = arith.constant 0 : i32
    return %c0_i32, %c0_i32_0 : i32, i32
  }
  func.func @transform_2(%arg0: i32) -> (i32, i32) {
    %c0_i32 = arith.constant 0 : i32
    %c0_i32_0 = arith.constant 0 : i32
    %c0_i32_1 = arith.constant 0 : i32
    return %c0_i32, %c0_i32_0 : i32, i32
  }
  func.func @transform_3(%arg0: i32) -> (i32, i32) {
    %c0_i32 = arith.constant 0 : i32
    %c0_i32_0 = arith.constant 0 : i32
    %c0_i32_1 = arith.constant 0 : i32
    return %c0_i32, %c0_i32_0 : i32, i32
  }
  func.func @transform_4(%arg0: i32) -> (i32, i32) {
    %c0_i32 = arith.constant 0 : i32
    %c0_i32_0 = arith.constant 0 : i32
    %c0_i32_1 = arith.constant 0 : i32
    return %c0_i32, %c0_i32_0 : i32, i32
  }
  func.func @transform_5(%arg0: i32) -> (i32, i32) {
    %c0_i32 = arith.constant 0 : i32
    %c0_i32_0 = arith.constant 0 : i32
    %c0_i32_1 = arith.constant 0 : i32
    return %c0_i32, %c0_i32_0 : i32, i32
  }
  func.func @transform_6(%arg0: i32) -> (i32, i32) {
    %c0_i32 = arith.constant 0 : i32
    %c0_i32_0 = arith.constant 0 : i32
    %c0_i32_1 = arith.constant 0 : i32
    return %c0_i32, %c0_i32_0 : i32, i32
  }
  func.func @transform_7(%arg0: i32) -> (i32, i32) {
    %c0_i32 = arith.constant 0 : i32
    %c0_i32_0 = arith.constant 0 : i32
    return %arg0, %c0_i32 : i32, i32
  }
}

</mosaic_0001>

<bundles_post_ra>
// kernel: tpu_custom_call.1
= control target key start
LH: loop header
LB: loop body
LE: loop exit
PB: predicated region body
PF: predicated region fallthrough
CT: control target
= control target key end

     0   :  { %12 = vsyncpa [#allocation3], 0  ;;  %s1071_s0 = inlined_call_operand.vmem [shape: f32[8,300], index: 0, kind: input, shape index: {}]   ;;  %s1072_s1 = inlined_call_operand.hbm [shape: bf16[300,256], index: 1, kind: input, shape index: {}]   ;;  %s1073_s2 = inlined_call_operand.vmem [shape: f32[1,256], index: 2, kind: input, shape index: {}]   ;;  %s1074_s3 = inlined_call_operand.hbm [shape: bf16[256,128], index: 3, kind: input, shape index: {}]   ;;  %s1075_s4 = inlined_call_operand.vmem [shape: f32[1,128], index: 4, kind: input, shape index: {}]   ;;  %s1076_s5 = inlined_call_operand.vmem [shape: bf16[128,4], index: 5, kind: input, shape index: {}]   ;;  %s1077_s6 = inlined_call_operand.vmem [shape: f32[1,4], index: 6, kind: input, shape index: {}]   ;;  %s1078_s7 = inlined_call_operand.vmem [shape: f32[8,4], index: 7, kind: output, shape index: {}]  }
   0x1   :  { %13 = vsyncpa [#allocation5], 0  ;;  %s953_s24 = smov [#allocation2]   ;;  %s905_s28 = scalar_lea.hbm %s1072_s1, 4864 }
   0x2   :  { %s21_s25 = sshll.u32 %s953_s24, 4  ;;  %p906_p0 = scmp.ne.s32.totalorder %s1072_s1, %s905_s28  ;;  %s22_s25 = int_to_ptr.vmem [resolvable:$true] %s21_s25 }
   0x3   :  { %p909_p1 = scmp.lt.u32.totalorder %s905_s28, %s1072_s1 }
   0x5   :  { %p911_p2 = pnand %p909_p1, %p906_p0 }
   0x7   :  { %914 = shalt.err (!%p911_p2)
}
   0x8   :  { %s915_s10 = scalar_lea.vmem %s22_s25, 4864  ;;  %p920_p4 = scmp.lt.s32.totalorder %s22_s25, %s22_s25 }
   0x9   :  { %p916_p3 = scmp.ne.s32.totalorder %s22_s25, %s915_s10  ;;  %p921_p5 = scmp.lt.s32.totalorder %s915_s10, %s915_s10 }
   0xb   :  { %p922_p6 = por %p921_p5, %p920_p4 }
   0xd   :  { %p923_p7 = pnand %p922_p6, %p916_p3 }
   0xf   :  { %926 = shalt.err (!%p923_p7)
}
  0x10   :  { %s954_s11 = smov 128   ;;  %s955_s12 = smov 8  }
  0x11   :  { %27 = dma.hbm_to_vmem [thread:$0]  %s1072_s1, 4864, %s22_s25, [#allocation3], %s954_s11, %s954_s11, %s955_s12  }
  0x12   :  { %s956_s15 = smov [#allocation4]   ;;  %s927_s19 = scalar_lea.hbm %s1074_s3, 2048 }
  0x13   :  { %s35_s16 = sshll.u32 %s956_s15, 4  ;;  %p928_p8 = scmp.ne.s32.totalorder %s1074_s3, %s927_s19  ;;  %s36_s16 = int_to_ptr.vmem [resolvable:$true] %s35_s16 }
  0x14   :  { %p931_p9 = scmp.lt.u32.totalorder %s927_s19, %s1074_s3 }
  0x16   :  { %p933_p10 = pnand %p931_p9, %p928_p8 }
  0x18   :  { %936 = shalt.err (!%p933_p10)
}
  0x19   :  { %s937_s24 = scalar_lea.vmem %s36_s16, 2048  ;;  %p942_p12 = scmp.lt.s32.totalorder %s36_s16, %s36_s16 }
  0x1a   :  { %p938_p11 = scmp.ne.s32.totalorder %s36_s16, %s937_s24  ;;  %p943_p13 = scmp.lt.s32.totalorder %s937_s24, %s937_s24 }
  0x1c   :  { %p944_p0 = por %p943_p13, %p942_p12 }
  0x1e   :  { %p945_p1 = pnand %p944_p0, %p938_p11 }
  0x20   :  { %948 = shalt.err (!%p945_p1)
}
  0x21   :  { %s957_s1 = smov 64   ;;  %s958_s25 = smov 4  }
  0x22   :  { %41 = dma.hbm_to_vmem [thread:$0]  %s1074_s3, 2048, %s36_s16, [#allocation5], %s957_s1, %s957_s1, %s958_s25  }
  0x23   :  { %949 = dma.done.wait [#allocation3], 4864  }
  0x24   :  { %950 = vsyncadd [#allocation3], 4294962432 }
  0x25   :  { %951 = dma.done.wait [#allocation5], 2048  }
  0x26   :  { %952 = vsyncadd [#allocation5], 4294965248  ;;  %v824_v0 = vld [vmem:[#allocation2 + $0x4] ss:$8 sps:$4 sm:$0xff]   ;;  %v826_v1 = vld [vmem:[#allocation2] ss:$8 sps:$4 sm:$0xff]   ;;  %v101_v63 = vlaneseq }
  0x27   :  { %310 = vmatprep.subr.bf16.mxu0 %v824_v0  ;;  %v827_v2 = vld [vmem:[#allocation2 + $0x14] ss:$8 sps:$4 sm:$0xff]   ;;  %v829_v3 = vld [vmem:[#allocation2 + $0x10] ss:$8 sps:$4 sm:$0xff]   ;;  %v830_v4 = vld [vmem:[#allocation2 + $0x24] ss:$8 sps:$4 sm:$0xff]  }
  0x28   :  { %311 = vmatpush1.bf16.msra.mxu0 %v826_v1  ;;  %v832_v5 = vld [vmem:[#allocation2 + $0x20] ss:$8 sps:$4 sm:$0xff]   ;;  %v833_v6 = vld [vmem:[#allocation2 + $0x34] ss:$8 sps:$4 sm:$0xff]   ;;  %v835_v7 = vld [vmem:[#allocation2 + $0x30] ss:$8 sps:$4 sm:$0xff]  }
  0x29   :  { %312 = vmatprep.subr.bf16.mxu0 %v827_v2  ;;  %v836_v8 = vld [vmem:[#allocation2 + $0x44] ss:$8 sps:$4 sm:$0xff]   ;;  %v838_v9 = vld [vmem:[#allocation2 + $0x40] ss:$8 sps:$4 sm:$0xff]   ;;  %v839_v10 = vld [vmem:[#allocation2 + $0x54] ss:$8 sps:$4 sm:$0xff]  }
  0x2a   :  { %v841_v11 = vld [vmem:[#allocation2 + $0x50] ss:$8 sps:$4 sm:$0xff]   ;;  %v842_v12 = vld [vmem:[#allocation2 + $0x64] ss:$8 sps:$4 sm:$0xff]   ;;  %v844_v15 = vld [vmem:[#allocation2 + $0x60] ss:$8 sps:$4 sm:$0xff]  }
  0x2b   :  { %v56_v13 = vld [vmem:[%s1071_s0 + $0x8] sm:$0xff]  ;;  %v845_v16 = vld [vmem:[#allocation2 + $0x74] ss:$8 sps:$4 sm:$0xff]   ;;  %v847_v17 = vld [vmem:[#allocation2 + $0x70] ss:$8 sps:$4 sm:$0xff]   ;;  %v959_v52 = vmov 0  }
  0x2c   :  { %313 = vmatpush1.bf16.msra.mxu0 %v829_v3  ;;  %v59_v14 = vpack.c.bf16 %v56_v13, %v56_v13  ;;  %v848_v18 = vld [vmem:[#allocation2 + $0x84] ss:$8 sps:$4 sm:$0xff]   ;;  %v881_v19 = vld [vmem:[#allocation4 + $0x40] sm:$0xff]   ;;  %v850_v21 = vld [vmem:[#allocation2 + $0x80] ss:$8 sps:$4 sm:$0xff]   ;;  %vm303_vm0 = vcmask 1045504  }
  0x2d   :  { %314 = vmatprep.subr.bf16.mxu0 %v830_v4  ;;  %758 = vmatprep.subr.bf16.mxu1 %v881_v19  ;;  %v882_v20 = vld [vmem:[#allocation4] sm:$0xff]   ;;  %v883_v22 = vld [vmem:[#allocation4 + $0x48] sm:$0xff]   ;;  %v885_v24 = vld [vmem:[#allocation4 + $0x50] sm:$0xff]   ;;  %vm299_vm1 = vcmask 359424   ;;  %v960_v62 = vmov 0.0   ;;  %v102_v0 = vshrl.u32 %v101_v63, 7 }
  0x2e   :  { %342 = vmatprep.mubr.bf16.mxu0 %v59_v14  ;;  %759 = vmatpush3.bf16.msra.mxu1 %v882_v20  ;;  %v884_v23 = vld [vmem:[#allocation4 + $0x8] sm:$0xff]   ;;  %v886_v27 = vld [vmem:[#allocation4 + $0x10] sm:$0xff]   ;;  %v887_v28 = vld [vmem:[#allocation4 + $0x58] sm:$0xff]   ;;  %vm961_vm2 = vmmov 0   ;;  %vm684_vm3 = vcmask 31744  }
  0x2f   :  { %760 = vmatprep.subr.bf16.mxu1 %v883_v22  ;;  %v851_v25 = vld [vmem:[#allocation2 + $0x94] ss:$8 sps:$4 sm:$0xff]   ;;  %v853_v26 = vld [vmem:[#allocation2 + $0x90] ss:$8 sps:$4 sm:$0xff]   ;;  %v854_v29 = vld [vmem:[#allocation2 + $0xa4] ss:$8 sps:$4 sm:$0xff]  }
  0x30   :  { %315 = vmatpush1.bf16.msra.mxu0 %v832_v5  ;;  %v856_v30 = vld [vmem:[#allocation2 + $0xa0] ss:$8 sps:$4 sm:$0xff]   ;;  %v857_v31 = vld [vmem:[#allocation2 + $0xb4] ss:$8 sps:$4 sm:$0xff]   ;;  %v859_v35 = vld [vmem:[#allocation2 + $0xb0] ss:$8 sps:$4 sm:$0xff]  }
  0x31   :  { %316 = vmatprep.subr.bf16.mxu0 %v833_v6  ;;  %v888_v32 = vld [vmem:[#allocation4 + $0x18] sm:$0xff]   ;;  %v889_v33 = vld [vmem:[#allocation4 + $0x60] sm:$0xff]   ;;  %v891_v36 = vld [vmem:[#allocation4 + $0x68] sm:$0xff]   ;;  %v103_v1 = vsub.s32 0, %v102_v0  ;;  %v107_v3 = vsub.s32 1, %v102_v0 }
  0x32   :  { %761 = vmatpush3.bf16.msra.mxu1 %v884_v23  ;;  %v890_v34 = vld [vmem:[#allocation4 + $0x20] sm:$0xff]   ;;  %v860_v37 = vld [vmem:[#allocation2 + $0xc4] ss:$8 sps:$4 sm:$0xff]   ;;  %v892_v38 = vld [vmem:[#allocation4 + $0x28] sm:$0xff]  }
  0x33   :  { %762 = vmatprep.subr.bf16.mxu1 %v885_v24  ;;  %v862_v39 = vld [vmem:[#allocation2 + $0xc0] ss:$8 sps:$4 sm:$0xff]   ;;  %v863_v40 = vld [vmem:[#allocation2 + $0xd4] ss:$8 sps:$4 sm:$0xff]   ;;  %v865_v41 = vld [vmem:[#allocation2 + $0xd0] ss:$8 sps:$4 sm:$0xff]  }
  0x34   :  { %317 = vmatpush1.bf16.msra.mxu0 %v835_v7  ;;  %v866_v42 = vld [vmem:[#allocation2 + $0xe4] ss:$8 sps:$4 sm:$0xff]   ;;  %v868_v43 = vld [vmem:[#allocation2 + $0xe0] ss:$8 sps:$4 sm:$0xff]   ;;  %v869_v44 = vld [vmem:[#allocation2 + $0xf4] ss:$8 sps:$4 sm:$0xff]  }
  0x35   :  { %318 = vmatprep.subr.bf16.mxu0 %v836_v8  ;;  %v871_v45 = vld [vmem:[#allocation2 + $0xf0] ss:$8 sps:$4 sm:$0xff]   ;;  %v55_v46 = vld [vmem:[%s1071_s0] sm:$0xff]  ;;  %v877_v50 = vld [vmem:[#allocation2 + $0x114] ss:$8 sps:$4 sm:$0xff]  }
  0x36   :  { %763 = vmatpush3.bf16.msra.mxu1 %v886_v27  ;;  %v874_v47 = vld [vmem:[#allocation2 + $0x104] ss:$8 sps:$4 sm:$0xff]   ;;  %v58_v48 = vpack.c.bf16 %v55_v46, %v55_v46  ;;  %v872_v49 = vld [vmem:[#allocation2 + $0x100] ss:$8 sps:$4 sm:$0xff]   ;;  %v875_v51 = vld [vmem:[#allocation2 + $0x110] ss:$8 sps:$4 sm:$0xff]  }
  0x37   :  { %764 = vmatprep.subr.bf16.mxu1 %v887_v28  ;;  %v878_v53 = vld [vmem:[#allocation2 + $0x124] ss:$8 sps:$4 sm:$0x3f]   ;;  %v880_v54 = vld [vmem:[#allocation2 + $0x120] ss:$8 sps:$4 sm:$0x3f]  }
  0x38   :  { %319 = vmatpush1.bf16.msra.mxu0 %v838_v9  ;;  %v57_v55 = vld [vmem:[%s1071_s0 + $0x10] sm:$0xff]  ;;  %v305_v56 = vsel %vm303_vm0, %v880_v54, 0  ;;  %v893_v58 = vld [vmem:[#allocation4 + $0x70] sm:$0xff]   ;;  %v895_v60 = vld [vmem:[#allocation4 + $0x78] sm:$0xff]  }
  0x39   :  { %320 = vmatprep.subr.bf16.mxu0 %v839_v10  ;;  %v60_v57 = vpack.c.bf16 %v57_v55, %v57_v55  ;;  %v894_v59 = vld [vmem:[#allocation4 + $0x30] sm:$0xff]   ;;  %v896_v61 = vld [vmem:[#allocation4 + $0x38] sm:$0xff]   ;;  %v900_v19 = vld [vmem:[%s1076_s5 + $0x18] sm:$0xff]  }
  0x3a   :  { %765 = vmatpush3.bf16.msra.mxu1 %v888_v32  ;;  %v99_v2 = vld [vmem:[%s1073_s2] sm:$0x3]  ;;  %v903_v22 = vld [vmem:[%s1076_s5 + $0x30] sm:$0xff]   ;;  %v904_v23 = vld [vmem:[%s1076_s5 + $0x38] sm:$0xff]  }
  0x3b   :  { %766 = vmatprep.subr.bf16.mxu1 %v889_v33  ;;  %v104_v4 = vrot.slane %v99_v2, %v103_v1  ;;  %v108_v5 = vrot.slane %v99_v2, %v107_v3  ;;  %v901_v20 = vld [vmem:[%s1076_s5 + $0x20] sm:$0xff]  }
  0x3c   :  { %321 = vmatpush1.bf16.msra.mxu0 %v841_v11  ;;  %v749_v33 = vld [vmem:[%s1077_s6] ss:$0 sm:$0xff] }
  0x3d   :  { %322 = vmatprep.subr.bf16.mxu0 %v842_v12 }
  0x3e   :  { %767 = vmatpush3.bf16.msra.mxu1 %v890_v34 }
  0x3f   :  { %768 = vmatprep.subr.bf16.mxu1 %v891_v36 }
  0x40   :  { %323 = vmatpush1.bf16.msra.mxu0 %v844_v15  ;;  %v897_v15 = vld [vmem:[%s1076_s5] sm:$0xff]  }
  0x41   :  { %324 = vmatprep.subr.bf16.mxu0 %v845_v16 }
  0x42   :  { %769 = vmatpush3.bf16.msra.mxu1 %v892_v38 }
  0x43   :  { %770 = vmatprep.subr.bf16.mxu1 %v893_v58 }
  0x44   :  { %325 = vmatpush1.bf16.msra.mxu0 %v847_v17  ;;  %v898_v17 = vld [vmem:[%s1076_s5 + $0x8] sm:$0xff]  }
  0x45   :  { %326 = vmatprep.subr.bf16.mxu0 %v848_v18  ;;  %v899_v18 = vld [vmem:[%s1076_s5 + $0x10] sm:$0xff]  }
  0x46   :  { %771 = vmatpush3.bf16.msra.mxu1 %v894_v59 }
  0x47   :  { %772 = vmatprep.subr.bf16.mxu1 %v895_v60 }
  0x48   :  { %327 = vmatpush1.bf16.msra.mxu0 %v850_v21  ;;  %v902_v21 = vld [vmem:[%s1076_s5 + $0x28] sm:$0xff]  }
  0x49   :  { %328 = vmatprep.subr.bf16.mxu0 %v851_v25  ;;  %v732_v25 = vld [vmem:[%s1075_s4] ss:$0 sm:$0xff] }
  0x4a   :  { %773 = vmatpush3.bf16.msra.mxu1 %v896_v61 }
  0x4b   :  { %789 = vmatprep.subr.bf16.mxu1 %v960_v62 }
  0x4c   :  { %329 = vmatpush1.bf16.msra.mxu0 %v853_v26 }
  0x4d   :  { %330 = vmatprep.subr.bf16.mxu0 %v854_v29 }
  0x50   :  { %331 = vmatpush1.bf16.msra.mxu0 %v856_v30 }
  0x51   :  { %332 = vmatprep.subr.bf16.mxu0 %v857_v31 }
  0x54   :  { %333 = vmatpush1.bf16.msra.mxu0 %v859_v35 }
  0x55   :  { %334 = vmatprep.subr.bf16.mxu0 %v860_v37 }
  0x58   :  { %335 = vmatpush1.bf16.msra.mxu0 %v862_v39 }
  0x59   :  { %336 = vmatprep.subr.bf16.mxu0 %v863_v40 }
  0x5c   :  { %337 = vmatpush1.bf16.msra.mxu0 %v865_v41 }
  0x5d   :  { %338 = vmatprep.subr.bf16.mxu0 %v866_v42 }
  0x60   :  { %339 = vmatpush1.bf16.msra.mxu0 %v868_v43 }
  0x61   :  { %340 = vmatprep.subr.bf16.mxu0 %v869_v44 }
  0x64   :  { %341 = vmatpush1.bf16.msra.mxu0 %v871_v45 }
  0x65   :  { %351 = vmatprep.subr.bf16.mxu0 %v874_v47 }
  0x67   :  { %343 = vmatmul.mubr.bf16.vlgmr.msra.gmra.mrb[0].mxu0 %v58_v48 }
  0x68   :  { %352 = vmatpush1.bf16.msra.mxu0 %v872_v49  ;;  %383 = vmatprep.mubr.bf16.mxu0 %v959_v52 }
  0x69   :  { %353 = vmatprep.subr.bf16.mxu0 %v877_v50 }
  0x6c   :  { %354 = vmatpush1.bf16.msra.mxu0 %v875_v51 }
  0x6d   :  { %730 = vmatprep.subr.msk.bf16.mxu0 %vm303_vm0, %v878_v53 }
  0x70   :  { %356 = vmatpush1.bf16.msra.mxu0 %v305_v56 }
  0x73   :  { %731 = vmatmul.mubr.msk.bf16.vlgmr.msra.gmra.mrb[0].mxu0 %vm299_vm1, %v60_v57 }
 0x146   :  { %v385_v6 = vpop.f32.mrb[0].mxu0 }
 0x147   :  { %v809_v7 = vadd.f32 %v385_v6, %v104_v4  ;;  %v387_v8 = vpop.f32.mrb[1].mxu0 }
 0x148   :  { %v810_v9 = vadd.f32 %v387_v8, %v108_v5  ;;  %v389_v10 = vpop.f32.mrb[2].mxu0 }
 0x149   :  { %v392_v11 = vmax.f32 %v809_v7, 0.0  ;;  %v390_v12 = vpop.f32.mrb[3].mxu0 }
 0x14a   :  { %v393_v13 = vmax.f32 %v810_v9, 0.0 }
 0x14b   :  { %v394_v16 = vpack.c.bf16 %v392_v11, %v392_v11 }
 0x14c   :  { %v395_v14 = vpack.c.bf16 %v393_v13, %v393_v13 }
 0x14e   :  { %563 = vmatprep.mubr.bf16.mxu1 %v395_v14 }
 0x14f   :  { %564 = vmatmul.mubr.bf16.vlgmr.msra.gmra.mrb[0].mxu1 %v394_v16 }
 0x150   :  { %790 = vmatpush3.bf16.msra.mxu1 %v897_v15  ;;  %805 = vmatprep.mubr.msk.bf16.mxu1 %vm961_vm2, %v960_v62 }
 0x151   :  { %791 = vmatprep.subr.bf16.mxu1 %v960_v62 }
 0x154   :  { %792 = vmatpush3.bf16.msra.mxu1 %v898_v17 }
 0x155   :  { %793 = vmatprep.subr.bf16.mxu1 %v960_v62 }
 0x158   :  { %794 = vmatpush3.bf16.msra.mxu1 %v899_v18 }
 0x159   :  { %795 = vmatprep.subr.bf16.mxu1 %v960_v62 }
 0x15c   :  { %796 = vmatpush3.bf16.msra.mxu1 %v900_v19 }
 0x15d   :  { %797 = vmatprep.subr.bf16.mxu1 %v960_v62 }
 0x160   :  { %798 = vmatpush3.bf16.msra.mxu1 %v901_v20 }
 0x161   :  { %799 = vmatprep.subr.bf16.mxu1 %v960_v62 }
 0x164   :  { %800 = vmatpush3.bf16.msra.mxu1 %v902_v21 }
 0x165   :  { %801 = vmatprep.subr.bf16.mxu1 %v960_v62 }
 0x168   :  { %802 = vmatpush3.bf16.msra.mxu1 %v903_v22 }
 0x169   :  { %803 = vmatprep.subr.bf16.mxu1 %v960_v62 }
 0x16c   :  { %804 = vmatpush3.bf16.msra.mxu1 %v904_v23 }
 0x222   :  { %v774_v24 = vpop.f32.mrb[0].mxu1 }
 0x223   :  { %v775_v26 = vpop.f32.mrb[1].mxu1 }
 0x224   :  { %v776_v27 = vadd.f32 %v775_v26, %v774_v24  ;;  %v777_v28 = vpop.f32.mrb[2].mxu1 }
 0x225   :  { %v778_v29 = vpop.f32.mrb[3].mxu1 }
 0x226   :  { %v566_v30 = vadd.f32 %v776_v27, %v732_v25 }
 0x228   :  { %v571_v31 = vmax.f32 %v566_v30, 0.0 }
 0x22a   :  { %v572_v32 = vpack.c.bf16 %v571_v31, %v571_v31 }
 0x22c   :  { %806 = vmatmul.mubr.bf16.vlgmr.msra.gmra.mrb[4].mxu1 %v572_v32 }
 0x2ff   :  { %v678_v34 = vpop.f32.mrb[4].mxu1 }
 0x300   :  { %v679_v35 = vadd.f32 %v749_v33, %v678_v34  ;;  %v807_v36 = vpop.f32.mrb[5].mxu1 }
 0x301   :  { %v681_v37 = vpop.f32.mrb[6].mxu1 }
 0x302   :  { %685 = vst.msk [vmem:[%s1078_s7] sm:$0xff] %vm684_vm3, %v679_v35  ;;  %v808_v38 = vpop.f32.mrb[7].mxu1 }
 0x303   :  { %690 = vsyncpa [#allocation3], 1 }
 0x304   :  { %691 = vsyncpa [#allocation5], 1 }

</bundles_post_ra>
